<compile_context>
chip_gen: v5e
topology: v5e:2x2
jax: 0.10.0
libtpu: 0.0.40
codegen_flags: <defaults>
</compile_context>

<pallas_src>
import functools

import jax
import jax.numpy as jnp
from jax.experimental import pallas as pl
from jax.experimental.pallas import tpu as pltpu


def _lsce_kernel(pred_ref, tgt_ref, out_ref, *, smoothing):
    x = pred_ref[...].astype(jnp.float32)                     # (tn, C), f32 math
    tn, C = x.shape

    # log-sum-exp pieces (numerically stable).
    m = jnp.max(x, axis=-1, keepdims=True)                    # (tn, 1)
    lse = jnp.log(jnp.sum(jnp.exp(x - m), axis=-1, keepdims=True))  # (tn, 1)

    off_w = jnp.float32(smoothing / (C - 1.0))
    on_w = jnp.float32(1.0 - smoothing)

    # (1, C) class iota; the compare broadcasts against (tn, 1) targets.
    col = jax.lax.broadcasted_iota(jnp.int32, (1, C), 1)
    w = jnp.where(col == tgt_ref[...], on_w, off_w)           # (tn, C) via broadcast
    wx = jnp.sum(w * x, axis=-1, keepdims=True)               # (tn, 1)

    # sum_c(w_c) == 1, so  loss = (m + lse) - sum_c(w_c * x_c)
    out_ref[...] = m + lse - wx


def _round_up(x, m):
    return -(-x // m) * m


def _pick_row_tile(n_rows, n_cols, itemsize, vmem_limit_bytes):
    """Row tile: multiple of 8, VMEM-budgeted (dtype-aware), and small enough
    that the grid has >= 2 steps whenever there is enough data."""
    # Per-row footprint: double-buffered input block + ~3 f32 tile-sized passes.
    per_row = n_cols * (2 * itemsize + 3 * 4)
    cap = int((0.75 * vmem_limit_bytes) // max(per_row, 1))
    cap = max(8, min(cap, 8192))
    cap = (cap // 8) * 8

    rows8 = _round_up(n_rows, 8)
    if cap >= rows8:
        if rows8 >= 16:
            # Guarantee at least 2 grid steps (v7x megacore, DMA pipelining).
            cap = max(8, _round_up((rows8 + 1) // 2, 8))
        else:
            cap = rows8
    return cap


def label_smoothing_cross_entropy(pred, target, smoothing=0.1, *, row_tile=None):
    """pred: (..., C) float32/bfloat16, target: (...,) int -> scalar float32."""
    C = pred.shape[-1]
    pred2d = pred.reshape(-1, C)
    N = pred2d.shape[0]
    tgt2d = target.astype(jnp.int32).reshape(N, 1)

    # Generation-aware scoped-VMEM budget: 64 MiB on 128 MiB chips (v5e/v6e),
    # ~48 MiB on 64 MiB-per-core chips (v7x).
    try:
        vmem_cap = int(pltpu.get_tpu_info().vmem_capacity_bytes)
    except Exception:
        vmem_cap = 64 * 1024 * 1024  # conservative fallback (v7x-sized)
    vmem_limit = min(64 * 1024 * 1024,
                     max(vmem_cap - 16 * 1024 * 1024, vmem_cap // 2))

    if row_tile is None:
        row_tile = _pick_row_tile(N, C, pred2d.dtype.itemsize, vmem_limit)

    # Pad rows up to a multiple of the tile; padded rows (zeros / target 0)
    # produce finite losses that are sliced off before the mean.
    n_pad = _round_up(N, row_tile)
    if n_pad != N:
        pred2d = jnp.pad(pred2d, ((0, n_pad - N), (0, 0)))
        tgt2d = jnp.pad(tgt2d, ((0, n_pad - N), (0, 0)))

    kernel = functools.partial(_lsce_kernel, smoothing=float(smoothing))

    per_row = pl.pallas_call(
        kernel,
        out_shape=jax.ShapeDtypeStruct((n_pad, 1), jnp.float32),
        grid_spec=pltpu.PrefetchScalarGridSpec(
            num_scalar_prefetch=0,
            grid=(n_pad // row_tile,),
            in_specs=[
                pl.BlockSpec((row_tile, C), lambda i: (i, 0)),
                pl.BlockSpec((row_tile, 1), lambda i: (i, 0)),
            ],
            out_specs=pl.BlockSpec((row_tile, 1), lambda i: (i, 0)),
        ),
        compiler_params=pltpu.CompilerParams(
            dimension_semantics=("parallel",),
            vmem_limit_bytes=vmem_limit,
        ),
    )(pred2d, tgt2d)

    # Mean over the real rows only (tree reduction in plain JAX).
    return jnp.mean(per_row[:N, 0])


def _reference(pred, target, smoothing=0.1):
    # Pure-JAX reference matching the PyTorch module.
    log_prob = jax.nn.log_softmax(pred.astype(jnp.float32), axis=-1)
    C = pred.shape[-1]
    weight = jnp.full(log_prob.shape, smoothing / (C - 1.0), jnp.float32)
    onehot = jax.nn.one_hot(target, C, dtype=jnp.float32)
    weight = jnp.where(onehot > 0, 1.0 - smoothing, weight)
    return jnp.mean(jnp.sum(-weight * log_prob, axis=-1))


if __name__ == "__main__":
    key = jax.random.PRNGKey(0)

    # Case 1: aligned shapes (16 samples, 128 classes).
    k1, k2, k3, k4 = jax.random.split(key, 4)
    pred_a = jax.random.normal(k1, (16, 128), dtype=jnp.float32)
    tgt_a = jax.random.randint(k2, (16,), 0, 128, dtype=jnp.int32)
    loss_a = jax.block_until_ready(
        label_smoothing_cross_entropy(pred_a, tgt_a, smoothing=0.1))
    ref_a = _reference(pred_a, tgt_a, smoothing=0.1)
    assert jnp.allclose(loss_a, ref_a, atol=1e-5, rtol=1e-5), (loss_a, ref_a)

    # Case 2: awkward shapes (13 samples, 100 classes) -> exercises row padding.
    pred_b = jax.random.normal(k3, (13, 100), dtype=jnp.float32)
    tgt_b = jax.random.randint(k4, (13,), 0, 100, dtype=jnp.int32)
    loss_b = jax.block_until_ready(
        label_smoothing_cross_entropy(pred_b, tgt_b, smoothing=0.1))
    ref_b = _reference(pred_b, tgt_b, smoothing=0.1)
    assert jnp.allclose(loss_b, ref_b, atol=1e-5, rtol=1e-5), (loss_b, ref_b)

    print("KERNEL_OK")
</pallas_src>

<mosaic_0001>
module attributes {stable_mosaic.version = 11 : i64} {
  func.func @_lsce_kernel(%arg0: i32, %arg1: memref<8x128xf32, #tpu.memory_space<vmem>>, %arg2: memref<8x1xi32, #tpu.memory_space<vmem>>, %arg3: memref<8x1xf32, #tpu.memory_space<vmem>>) attributes {dimension_semantics = [#tpu.dimension_semantics<parallel>], iteration_bounds = array<i64: 2>, scalar_prefetch = 0 : i64, scratch_operands = 0 : i64, tpu.core_type = #tpu.core_type<tc>, window_params = [{transform_indices = @transform_0, window_bounds = array<i64: 8, 128>}, {transform_indices = @transform_1, window_bounds = array<i64: 8, 1>}, {transform_indices = @transform_2, window_bounds = array<i64: 8, 1>}]} {
    %c0 = arith.constant 0 : index
    %c0_0 = arith.constant 0 : index
    %0 = vector.load %arg1[%c0, %c0_0] : memref<8x128xf32, #tpu.memory_space<vmem>>, vector<8x128xf32>
    %cst = arith.constant dense<0xFF800000> : vector<8xf32>
    %1 = vector.multi_reduction <maximumf>, %0, %cst [1] : vector<8x128xf32> to vector<8xf32>
    %2 = vector.shape_cast %1 : vector<8xf32> to vector<8x1xf32>
    %3 = vector.broadcast %2 : vector<8x1xf32> to vector<8x128xf32>
    %4 = arith.subf %0, %3 : vector<8x128xf32>
    %5 = math.exp %4 : vector<8x128xf32>
    %cst_1 = arith.constant dense<0.000000e+00> : vector<8xf32>
    %6 = vector.multi_reduction <add>, %5, %cst_1 [1] : vector<8x128xf32> to vector<8xf32>
    %7 = vector.shape_cast %6 : vector<8xf32> to vector<8x1xf32>
    %8 = math.log %7 : vector<8x1xf32>
    %9 = tpu.iota {dimensions = array<i32: 1>} : vector<1x128xi32>
    %c0_2 = arith.constant 0 : index
    %c0_3 = arith.constant 0 : index
    %10 = vector.load %arg2[%c0_2, %c0_3] : memref<8x1xi32, #tpu.memory_space<vmem>>, vector<8x1xi32>
    %11 = vector.broadcast %9 : vector<1x128xi32> to vector<8x128xi32>
    %12 = vector.broadcast %10 : vector<8x1xi32> to vector<8x128xi32>
    %13 = arith.cmpi eq, %11, %12 : vector<8x128xi32>
    %cst_4 = arith.constant 0.899999976 : f32
    %cst_5 = arith.constant 7.87401571E-4 : f32
    %14 = vector.broadcast %cst_4 : f32 to vector<8x128xf32>
    %15 = vector.broadcast %cst_5 : f32 to vector<8x128xf32>
    %16 = arith.select %13, %14, %15 : vector<8x128xi1>, vector<8x128xf32>
    %17 = arith.mulf %16, %0 : vector<8x128xf32>
    %cst_6 = arith.constant dense<0.000000e+00> : vector<8xf32>
    %18 = vector.multi_reduction <add>, %17, %cst_6 [1] : vector<8x128xf32> to vector<8xf32>
    %19 = vector.shape_cast %18 : vector<8xf32> to vector<8x1xf32>
    %20 = arith.addf %2, %8 : vector<8x1xf32>
    %21 = arith.subf %20, %19 : vector<8x1xf32>
    %c0_7 = arith.constant 0 : index
    %c0_8 = arith.constant 0 : index
    %22 = vector.load %arg3[%c0_7, %c0_8] : memref<8x1xf32, #tpu.memory_space<vmem>>, vector<8x1xf32>
    tpu.vector_store %arg3[%c0_7, %c0_8], %21 {strides = array<i32>} : memref<8x1xf32, #tpu.memory_space<vmem>>, vector<8x1xf32>,
    return
  }
  func.func @transform_0(%arg0: i32) -> (i32, i32) {
    %c0_i32 = arith.constant 0 : i32
    %c0_i32_0 = arith.constant 0 : i32
    return %arg0, %c0_i32 : i32, i32
  }
  func.func @transform_1(%arg0: i32) -> (i32, i32) {
    %c0_i32 = arith.constant 0 : i32
    %c0_i32_0 = arith.constant 0 : i32
    return %arg0, %c0_i32 : i32, i32
  }
  func.func @transform_2(%arg0: i32) -> (i32, i32) {
    %c0_i32 = arith.constant 0 : i32
    %c0_i32_0 = arith.constant 0 : i32
    return %arg0, %c0_i32 : i32, i32
  }
}

</mosaic_0001>

<bundles_post_ra>
// kernel: tpu_custom_call.1
= control target key start
LH: loop header
LB: loop body
LE: loop exit
PB: predicated region body
PF: predicated region fallthrough
CT: control target
= control target key end

     0   :  { %s296_s9 = smov 0   ;;  %s321_s0 = inlined_call_operand.vmem [shape: f32[16,128], index: 0, kind: input, shape index: {}]   ;;  %s322_s1 = inlined_call_operand.vmem [shape: s32[16,1], index: 1, kind: input, shape index: {}]   ;;  %s323_s2 = inlined_call_operand.vmem [shape: f32[16,1], index: 2, kind: output, shape index: {}]  }
   0x1 LB: > { %s246_s10 = sadd.s32 4294967295, %s277_s9   ;;  %p250_p0 = scmp.ge.s32.totalorder %s277_s9, 1  ;;  %s277_s9 = sphi %s296_s9, %s12_s9  }
   0x2   : > { %p120_p1 = scmp.lt.s32.totalorder %s277_s9, 3 }
   0x4   : > { %p121_p2 = pnand %p250_p0, %p120_p1 }
   0x5   : > { %p144_p3 = scmp.lt.s32.totalorder (!%p121_p2), %s246_s10, 1 }
   0x6   : > { %124 = sbr.rel (%p121_p2) target bundleno = 273 (0x111), region = 28 }
   0xb   : > { %v279_v0 = vmov 0   ;;  %s325_s10 = smov (!%p144_p3, %s246_s10), 1  ;;  %v166_v7 = vlaneseq  ;;  %v280_v10 = vmov 0.0007874016   ;;  %vm179_vm1 = vcmask 7168  }
   0xc   : > { %266 = vset.pattern.permute.xlu0 %v279_v0  ;;  %s304_s11 = sshll.u32 %s325_s10, 3 }
   0xd   : > { %s147_s14 = scalar_lea.vmem %s321_s0, %s304_s11  ;;  %s151_s17 = scalar_lea.vmem %s322_s1, %s304_s11  ;;  %v167_v8 = vand.u32 127, %v166_v7 }
   0xe   : > { %v156_v1 = vld [vmem:[%s147_s14] sm:$0xff]  ;;  %s155_s20 = scalar_lea.vmem %s323_s2, %s304_s11 }
   0xf   : > { %157 = vmax.xlane.f32.xlu0 %v156_v1  ;;  %v168_v2 = vld [vmem:[%s151_s17] sm:$0xff] }
  0x23   : > { %170 = vperm.xlu0 %266, %v168_v2  }
  0x82   : > { %v158_v3 = vpop.xlane.xlu0 %157 }
  0x83   : > { %v159_v4 = vsub.f32 %v156_v1, %v158_v3 }
  0x85   : > { %v160_v5 = vmul.f32 1.442695, %v159_v4 }
  0x87   : > { %267 = vpow2.f32 %v160_v5 }
  0x8d   : > { %v268_v6 = vpop.eup %267 }
  0x8e   : > { %162 = vadd.xlane.f32.xlu1 %v268_v6 }
  0x95   : > { %v171_v9 = vpop.permute.xlu0 %170 }
  0x96   : > { %vm172_vm0 = vcmp.eq.s32.totalorder %v167_v8, %v171_v9 }
  0x97   : > { %v173_v11 = vsel %vm172_vm0, 0.9, %v280_v10 }
  0x98   : > { %v174_v12 = vmul.f32 %v173_v11, %v156_v1 }
  0x9a   : > { %175 = vadd.xlane.f32.xlu1 %v174_v12 }
 0x101   : > { %v163_v13 = vpop.xlane.xlu1 %162 }
 0x102   : > { %269 = vlog2.f32 %v163_v13 }
 0x108   : > { %v270_v14 = vpop.eup %269 }
 0x109   : > { %v165_v15 = vmul.f32 0.6931472, %v270_v14 }
 0x10b   : > { %v177_v16 = vadd.f32 %v165_v15, %v158_v3 }
 0x10d   : > { %v176_v17 = vpop.xlane.xlu1 %175 }
 0x10e   : > { %v178_v18 = vsub.f32 %v177_v16, %v176_v17 }
 0x110   : > { %180 = vst.msk [vmem:[%s155_s20] sm:$0xff] %vm179_vm1, %v178_v18 }
 0x111 PF: > { %s12_s9 = sadd.s32 1, %s277_s9  }
 0x112   : > { %p9_p4 = scmp.ge.s32.totalorder %s12_s9, 4  }
 0x114   :  { %11 = sbr.rel (!%p9_p4) target bundleno = 1 (0x1), region = 61 }

</bundles_post_ra>
